<compile_context>
chip_gen: v7x
topology: tpu7x:2x2x1
jax: 0.10.0
libtpu: 0.0.40
codegen_flags: <defaults>
</compile_context>

<pallas_src>
import numpy as np
import jax
import jax.numpy as jnp
from jax import lax
from jax.experimental import pallas as pl
from jax.experimental.pallas import tpu as pltpu


def _cdiv(a: int, b: int) -> int:
    return -(-a // b)


def _round_up(v: int, m: int) -> int:
    return _cdiv(v, m) * m


def _fc1_kernel(x_ref, w_ref, b_ref, o_ref):
    """One (p, k) grid step.

    x_ref : (B, tk)   K-slice of the activations
    w_ref : (C, tk)   K-slice of the weight, dense in C (nn.Linear layout)
    b_ref : (1, C)    bias (resident across the whole grid)
    o_ref : (B, C)    f32 partial-output slab for split p, resident across k
    """
    p = pl.program_id(0)
    k = pl.program_id(1)

    @pl.when(k == 0)
    def _init():
        # Fold the bias into the p == 0 slab exactly once; other slabs start at 0.
        init = jnp.where(p == 0, b_ref[...], 0.0)            # (1, C)
        o_ref[...] = jnp.broadcast_to(init, o_ref.shape)

    # y[b, c] += sum_k x[b, k] * w[c, k]  -- MXU matmul with transposed rhs, so
    # the weight never needs a relayout (dense in C in both HBM and VMEM).
    o_ref[...] += lax.dot_general(
        x_ref[...],
        w_ref[...],
        dimension_numbers=(((1,), (1,)), ((), ())),
        preferred_element_type=jnp.float32,
    )


def prepare_fc1_params(weight, bias, *, tk_target: int = 16384, num_splits: int = 2):
    """One-time layout prep (hoisted out of the per-call forward).

    Keeps the weight dense in the class dim (no zero padding of the dominant
    HBM stream); only the contraction dim K is zero-padded, by < 256*num_splits.
    """
    C, IN = weight.shape
    assert bias.shape == (C,)

    n_k = max(_cdiv(IN, tk_target), 1)               # tile COUNT first ...
    num_p = num_splits if n_k >= num_splits else 1   # 2-way K split (v7x dual-TC)
    n_k = _round_up(n_k, num_p)
    tk = _round_up(_cdiv(IN, n_k), 256)              # ... then MXU-aligned tile
    k_pad = n_k * tk

    w_p = weight.astype(jnp.float32)
    if k_pad != IN:
        w_p = jnp.pad(w_p, ((0, 0), (0, k_pad - IN)))
    b_p = bias.astype(jnp.float32).reshape(1, C)

    meta = dict(C=C, IN=IN, k_pad=k_pad, tk=tk, num_p=num_p, num_k=n_k // num_p)
    return w_p, b_p, meta


def fc1_forward(x, w_p, b_p, meta):
    """y = x @ weight.T + bias  (exact nn.Linear semantics)."""
    B, IN = x.shape
    C, k_pad, tk = meta["C"], meta["k_pad"], meta["tk"]
    num_p, num_k = meta["num_p"], meta["num_k"]
    assert IN == meta["IN"] and w_p.shape == (C, k_pad)

    x_p = x if k_pad == IN else jnp.pad(x, ((0, 0), (0, k_pad - IN)))

    partial = pl.pallas_call(
        _fc1_kernel,
        out_shape=jax.ShapeDtypeStruct((num_p, B, C), jnp.float32),
        grid=(num_p, num_k),
        in_specs=[
            pl.BlockSpec((B, tk), lambda p, k: (0, p * num_k + k)),   # x K-slice
            pl.BlockSpec((C, tk), lambda p, k: (0, p * num_k + k)),   # W K-slice
            pl.BlockSpec((1, C), lambda p, k: (0, 0)),                # bias (resident)
        ],
        # Resident partial-output slab per split; accumulated into directly.
        out_specs=pl.BlockSpec((None, B, C), lambda p, k: (p, 0, 0)),
        compiler_params=pltpu.CompilerParams(
            dimension_semantics=("parallel", "arbitrary"),
        ),
    )(x_p, w_p, b_p)

    out = partial[0] if num_p == 1 else jnp.sum(partial, axis=0)
    return out.astype(x.dtype)


if __name__ == "__main__":
    # Small keyword-spotting-like shapes: in_dim = HuBERT feature size,
    # num_classes = number of keyword labels.
    batch, in_dim, num_classes = 8, 768, 12

    key = jax.random.PRNGKey(0)
    kx, kw, kb = jax.random.split(key, 3)
    x = jax.random.normal(kx, (batch, in_dim), dtype=jnp.float32)
    # nn.Linear default init: U(-1/sqrt(in_dim), 1/sqrt(in_dim)).
    bound = 1.0 / (in_dim ** 0.5)
    weight = jax.random.uniform(kw, (num_classes, in_dim), jnp.float32, -bound, bound)
    bias = jax.random.uniform(kb, (num_classes,), jnp.float32, -bound, bound)

    # Host float64 reference (exact nn.Linear semantics).
    ref = (np.asarray(x, np.float64) @ np.asarray(weight, np.float64).T
           + np.asarray(bias, np.float64))

    # 1) Default config: single large K tile, no split.
    w_p, b_p, meta = prepare_fc1_params(weight, bias)
    out = jax.block_until_ready(fc1_forward(x, w_p, b_p, meta))
    assert out.shape == (batch, num_classes)
    assert np.allclose(np.asarray(out, np.float64), ref, atol=1e-2, rtol=1e-2)

    # 2) Force multiple K tiles + the 2-way split (exercises K padding, the
    #    resident-output accumulation over the "arbitrary" axis, and the
    #    partial-slab sum).
    w_p2, b_p2, meta2 = prepare_fc1_params(weight, bias, tk_target=256, num_splits=2)
    out2 = jax.block_until_ready(fc1_forward(x, w_p2, b_p2, meta2))
    assert out2.shape == (batch, num_classes)
    assert np.allclose(np.asarray(out2, np.float64), ref, atol=1e-2, rtol=1e-2)

    print("KERNEL_OK")
</pallas_src>

<mosaic_0001>
module attributes {stable_mosaic.version = 11 : i64} {
  func.func @_fc1_kernel(%arg0: i32, %arg1: i32, %arg2: memref<8x768xf32, #tpu.memory_space<vmem>>, %arg3: memref<12x768xf32, #tpu.memory_space<vmem>>, %arg4: memref<1x12xf32, #tpu.memory_space<vmem>>, %arg5: memref<1x8x12xf32, #tpu.memory_space<vmem>>) attributes {dimension_semantics = [#tpu.dimension_semantics<parallel>, #tpu.dimension_semantics<arbitrary>], iteration_bounds = array<i64: 1, 1>, scalar_prefetch = 0 : i64, scratch_operands = 0 : i64, tpu.core_type = #tpu.core_type<tc>, window_params = [{transform_indices = @transform_0, window_bounds = array<i64: 8, 768>}, {transform_indices = @transform_1, window_bounds = array<i64: 12, 768>}, {pipeline_mode = #tpu.pipeline_mode<synchronous>, transform_indices = @transform_2, window_bounds = array<i64: 1, 12>}, {transform_indices = @transform_3, window_bounds = array<i64: 1, 8, 12>}]} {
    %c0_i32 = arith.constant 0 : i32
    %0 = arith.cmpi eq, %arg1, %c0_i32 : i32
    %1 = arith.extui %0 : i1 to i32
    %c0_i32_0 = arith.constant 0 : i32
    %2 = arith.cmpi ne, %1, %c0_i32_0 : i32
    scf.if %2 {
      %c0_i32_10 = arith.constant 0 : i32
      %12 = arith.cmpi eq, %arg0, %c0_i32_10 : i32
      %c0_11 = arith.constant 0 : index
      %c0_12 = arith.constant 0 : index
      %13 = vector.load %arg4[%c0_11, %c0_12] : memref<1x12xf32, #tpu.memory_space<vmem>>, vector<1x12xf32>
      %cst_13 = arith.constant 0.000000e+00 : f32
      %14 = vector.broadcast %cst_13 : f32 to vector<1x12xf32>
      %15 = arith.select %12, %13, %14 : vector<1x12xf32>
      %16 = vector.shape_cast %15 : vector<1x12xf32> to vector<1x12xf32>
      %17 = vector.broadcast %16 : vector<1x12xf32> to vector<8x12xf32>
      %c0_14 = arith.constant 0 : index
      %c0_15 = arith.constant 0 : index
      %c0_16 = arith.constant 0 : index
      %18 = vector.load %arg5[%c0_14, %c0_15, %c0_16] : memref<1x8x12xf32, #tpu.memory_space<vmem>>, vector<1x8x12xf32>
      %19 = vector.shape_cast %18 : vector<1x8x12xf32> to vector<8x12xf32>
      %20 = vector.shape_cast %17 : vector<8x12xf32> to vector<1x8x12xf32>
      tpu.vector_store %arg5[%c0_14, %c0_15, %c0_16], %20 {strides = array<i32>} : memref<1x8x12xf32, #tpu.memory_space<vmem>>, vector<1x8x12xf32>,
    } else {
    }
    %c0 = arith.constant 0 : index
    %c0_1 = arith.constant 0 : index
    %c0_2 = arith.constant 0 : index
    %3 = vector.load %arg5[%c0, %c0_1, %c0_2] : memref<1x8x12xf32, #tpu.memory_space<vmem>>, vector<1x8x12xf32>
    %4 = vector.shape_cast %3 : vector<1x8x12xf32> to vector<8x12xf32>
    %c0_3 = arith.constant 0 : index
    %c0_4 = arith.constant 0 : index
    %5 = vector.load %arg2[%c0_3, %c0_4] : memref<8x768xf32, #tpu.memory_space<vmem>>, vector<8x768xf32>
    %c0_5 = arith.constant 0 : index
    %c0_6 = arith.constant 0 : index
    %6 = vector.load %arg3[%c0_5, %c0_6] : memref<12x768xf32, #tpu.memory_space<vmem>>, vector<12x768xf32>
    %cst = arith.constant dense<0.000000e+00> : vector<8x12xf32>
    %7 = tpu.matmul %5, %6, %cst {dimension_numbers = #tpu.dot_dimension_numbers<[1], [1], [0], [0], [0, 0, 1, 0], [], []>} : vector<8x768xf32>, vector<12x768xf32>, vector<8x12xf32> -> vector<8x12xf32>
    %8 = arith.addf %4, %7 : vector<8x12xf32>
    %c0_7 = arith.constant 0 : index
    %c0_8 = arith.constant 0 : index
    %c0_9 = arith.constant 0 : index
    %9 = vector.load %arg5[%c0_7, %c0_8, %c0_9] : memref<1x8x12xf32, #tpu.memory_space<vmem>>, vector<1x8x12xf32>
    %10 = vector.shape_cast %9 : vector<1x8x12xf32> to vector<8x12xf32>
    %11 = vector.shape_cast %8 : vector<8x12xf32> to vector<1x8x12xf32>
    tpu.vector_store %arg5[%c0_7, %c0_8, %c0_9], %11 {strides = array<i32>} : memref<1x8x12xf32, #tpu.memory_space<vmem>>, vector<1x8x12xf32>,
    return
  }
  func.func @transform_0(%arg0: i32, %arg1: i32) -> (i32, i32) {
    %c1_i32 = arith.constant 1 : i32
    %0 = arith.muli %arg0, %c1_i32 : i32
    %1 = arith.addi %0, %arg1 : i32
    %c0_i32 = arith.constant 0 : i32
    %c0_i32_0 = arith.constant 0 : i32
    return %c0_i32, %1 : i32, i32
  }
  func.func @transform_1(%arg0: i32, %arg1: i32) -> (i32, i32) {
    %c1_i32 = arith.constant 1 : i32
    %0 = arith.muli %arg0, %c1_i32 : i32
    %1 = arith.addi %0, %arg1 : i32
    %c0_i32 = arith.constant 0 : i32
    %c0_i32_0 = arith.constant 0 : i32
    return %c0_i32, %1 : i32, i32
  }
  func.func @transform_2(%arg0: i32, %arg1: i32) -> (i32, i32) {
    %c0_i32 = arith.constant 0 : i32
    %c0_i32_0 = arith.constant 0 : i32
    %c0_i32_1 = arith.constant 0 : i32
    return %c0_i32, %c0_i32_0 : i32, i32
  }
  func.func @transform_3(%arg0: i32, %arg1: i32) -> (i32, i32, i32) {
    %c0_i32 = arith.constant 0 : i32
    %c0_i32_0 = arith.constant 0 : i32
    %c0_i32_1 = arith.constant 0 : i32
    return %arg0, %c0_i32, %c0_i32_0 : i32, i32, i32
  }
}

</mosaic_0001>

<bundles_post_ra>
// kernel: tpu_custom_call.1
= control target key start
LH: loop header
LB: loop body
LE: loop exit
PB: predicated region body
PF: predicated region fallthrough
CT: control target
= control target key end

     0   :  { %8 = vsyncpa [#allocation3], 0  ;;  %s480_s0 = inlined_call_operand.hbm [shape: f32[8,768], index: 0, kind: input, shape index: {}]   ;;  %s481_s1 = inlined_call_operand.hbm [shape: f32[12,768], index: 1, kind: input, shape index: {}]   ;;  %s482_s2 = inlined_call_operand.vmem [shape: f32[1,12], index: 2, kind: input, shape index: {}]   ;;  %s483_s3 = inlined_call_operand.hbm [shape: f32[1,8,12], index: 3, kind: output, shape index: {}]  }
   0x1   :  { %9 = vsyncpa [#allocation6], 0 }
   0x2   :  { %10 = vsyncpa [#allocation4], 0  ;;  %s409_s12 = smov [#allocation2]   ;;  %s410_s14 = smov [#allocation5]  }
   0x3   :  { %s21_s13 = sshll.u32 %s409_s12, 4  ;;  %s34_s15 = sshll.u32 %s410_s14, 4  ;;  %s22_s13 = int_to_ptr.vmem [resolvable:$true] %s21_s13  ;;  %s434_s15 = int_to_ptr.vmem [resolvable:$true] %s34_s15 }
   0x4   :  { %s337_s18 = scalar_lea.hbm %s480_s0, 768 }
   0x5   :  { %p338_p0 = scmp.ne.s32.totalorder %s480_s0, %s337_s18  ;;  %p341_p1 = scmp.lt.u32.totalorder %s337_s18, %s480_s0 }
   0x7   :  { %p343_p2 = pnand %p341_p1, %p338_p0 }
   0x9   :  { %346 = shalt.err (!%p343_p2)
}
   0xa   :  { %s347_s23 = scalar_lea.vmem %s22_s13, 768  ;;  %p352_p4 = scmp.lt.s32.totalorder %s22_s13, %s22_s13 }
   0xb   :  { %p348_p3 = scmp.ne.s32.totalorder %s22_s13, %s347_s23  ;;  %p353_p5 = scmp.lt.s32.totalorder %s347_s23, %s347_s23 }
   0xd   :  { %p354_p6 = por %p353_p5, %p352_p4 }
   0xf   :  { %p355_p7 = pnand %p354_p6, %p348_p3 }
  0x11   :  { %358 = shalt.err (!%p355_p7)
}
  0x12   :  { %24 = dma.hbm_to_vmem [thread:$0]  %s480_s0, 768, %s22_s13, [#allocation3]  }
  0x13   :  { %s359_s28 = scalar_lea.hbm %s481_s1, 1536 }
  0x14   :  { %p360_p8 = scmp.ne.s32.totalorder %s481_s1, %s359_s28  ;;  %p363_p9 = scmp.lt.u32.totalorder %s359_s28, %s481_s1 }
  0x16   :  { %p365_p10 = pnand %p363_p9, %p360_p8 }
  0x18   :  { %368 = shalt.err (!%p365_p10)
}
  0x19   :  { %s369_s6 = scalar_lea.vmem %s434_s15, 1536  ;;  %p374_p12 = scmp.lt.s32.totalorder %s434_s15, %s434_s15 }
  0x1a   :  { %p370_p11 = scmp.ne.s32.totalorder %s434_s15, %s369_s6  ;;  %p375_p13 = scmp.lt.s32.totalorder %s369_s6, %s369_s6 }
  0x1c   :  { %p376_p0 = por %p375_p13, %p374_p12 }
  0x1e   :  { %p377_p1 = pnand %p376_p0, %p370_p11 }
  0x20   :  { %380 = shalt.err (!%p377_p1)
}
  0x21   :  { %s411_s0 = smov 768   ;;  %s412_s7 = smov 48  }
  0x22   :  { %40 = dma.hbm_to_vmem [thread:$0]  %s481_s1, 1536, %s434_s15, [#allocation6], %s411_s0, %s411_s0, %s412_s7  }
  0x23   :  { %403 = dma.done.wait [#allocation3], 768  }
  0x24   :  { %404 = vsyncadd [#allocation3], 4294966528 }
  0x25   :  { %405 = dma.done.wait [#allocation6], 1536  }
  0x26   :  { %406 = vsyncadd [#allocation6], 4294965760  ;;  %v79_v0 = vld [vmem:[#allocation5 + $0x8] sm:$0xff]  ;;  %v85_v1 = vld [vmem:[#allocation5 + $0x38] sm:$0xf]  ;;  %vm69_vm0 = vcmask 97280  }
  0x27   :  { %v78_v2 = vld [vmem:[#allocation5] sm:$0xff]  ;;  %v320_v3 = vpack.c.bf16 %v85_v1, %v79_v0  ;;  %v84_v4 = vld [vmem:[#allocation5 + $0x30] sm:$0xf]  ;;  %v81_v5 = vld [vmem:[#allocation5 + $0x18] sm:$0xff]  ;;  %s413_s11 = smov [#allocation7]  }
  0x28   :  { %v87_v6 = vld [vmem:[#allocation5 + $0x48] sm:$0xf]  ;;  %v322_v7 = vpack.c.bf16 %v84_v4, %v78_v2  ;;  %v80_v9 = vld [vmem:[#allocation5 + $0x10] sm:$0xff]  ;;  %v86_v10 = vld [vmem:[#allocation5 + $0x40] sm:$0xf]  ;;  %s309_s12 = sshll.u32 %s413_s11, 4  ;;  %s310_s12 = int_to_ptr.vmem [resolvable:$true] %s309_s12 }
  0x29   :  { %v324_v8 = vpack.c.bf16 %v87_v6, %v81_v5  ;;  %v73_v11 = vld [vmem:[#allocation2 + $0x8] sm:$0xff]  ;;  %321 = vmatprep.subr.bf16.mxu0 %v320_v3  ;;  %v326_v12 = vpack.c.bf16 %v86_v10, %v80_v9  ;;  %v75_v13 = vld [vmem:[#allocation2 + $0x18] sm:$0xff]  ;;  %v82_v17 = vld [vmem:[#allocation5 + $0x20] sm:$0xff]  ;;  %s381_s13 = scalar_lea.vmem %s310_s12, 128  ;;  %p386_p3 = scmp.lt.s32.totalorder %s310_s12, %s310_s12 }
  0x2a   :  { %154 = vmatprep.mubr.f32.mxu0 %v73_v11  ;;  %v83_v14 = vld [vmem:[#allocation5 + $0x28] sm:$0xff]  ;;  %323 = vmatpush1.bf16.xpose.msra.mxu0 %v322_v7  ;;  %v89_v15 = vld [vmem:[#allocation5 + $0x58] sm:$0xf]  ;;  %v88_v18 = vld [vmem:[#allocation5 + $0x50] sm:$0xf]  ;;  %p382_p2 = scmp.ne.s32.totalorder %s310_s12, %s381_s13  ;;  %p387_p4 = scmp.lt.s32.totalorder %s381_s13, %s381_s13 }
  0x2b   :  { %325 = vmatprep.subr.bf16.mxu1 %v324_v8  ;;  %224 = vmatprep.mubr.f32.mxu1 %v75_v13  ;;  %v328_v16 = vpack.c.bf16 %v89_v15, %v83_v14  ;;  %v72_v19 = vld [vmem:[#allocation2] sm:$0xff]  ;;  %v330_v20 = vpack.c.bf16 %v88_v18, %v82_v17  ;;  %v74_v21 = vld [vmem:[#allocation2 + $0x10] sm:$0xff]  ;;  %v77_v22 = vld [vmem:[#allocation2 + $0x28] sm:$0xff] }
  0x2c   :  { %327 = vmatpush1.bf16.xpose.msra.mxu1 %v326_v12  ;;  %v76_v23 = vld [vmem:[#allocation2 + $0x20] sm:$0xff]  ;;  %p388_p5 = por %p387_p4, %p386_p3 }
  0x2d   :  { %329 = vmatprep.subr.bf16.mxu0 %v328_v16  ;;  %v319_v24 = vld [vmem:[%s482_s2] ss:$0 sm:$0xff] }
  0x2e   :  { %70 = vst.msk [vmem:[#allocation7] sm:$0xff] %vm69_vm0, %v319_v24  ;;  %p389_p6 = pnand %p388_p5, %p382_p2 }
  0x31   :  { %155 = vmatmul.mubr.f32.vlgmr.msra.gmra.mrb[0].mxu0 %v72_v19 }
  0x32   :  { %331 = vmatpush1.bf16.xpose.msra.mxu0 %v330_v20  ;;  %294 = vmatprep.mubr.f32.mxu0 %v77_v22 }
  0x33   :  { %225 = vmatmul.mubr.f32.vlgmr.msra.gmra.mrb[0].mxu1 %v74_v21 }
  0x35   :  { %v71_v30 = vld [vmem:[#allocation7] sm:$0xff] }
  0x39   :  { %295 = vmatmul.mubr.f32.vlgmr.msra.gmra.mrb[2].mxu0 %v76_v23 }
 0x104   :  { %v156_v25 = vpop.f32.mrb[0].mxu0 }
 0x105   :  { %v158_v26 = vpop.f32.mrb[1].mxu0 }
 0x106   :  { %v226_v27 = vpop.f32.mrb[0].mxu1 }
 0x107   :  { %v227_v28 = vadd.f32 %v226_v27, %v156_v25  ;;  %v228_v29 = vpop.f32.mrb[1].mxu1 }
 0x10c   :  { %v296_v31 = vpop.f32.mrb[2].mxu0 }
 0x10d   :  { %v297_v32 = vadd.f32 %v296_v31, %v227_v28  ;;  %v298_v33 = vpop.f32.mrb[3].mxu0 }
 0x10f   :  { %v300_v34 = vadd.f32 %v297_v32, %v71_v30 }
 0x111   :  { %302 = vst.msk [vmem:[#allocation7] sm:$0xff] %vm69_vm0, %v300_v34 }
 0x112   :  { %392 = shalt.err (!%p389_p6)
}
 0x113   :  { %s393_s15 = scalar_lea.hbm %s483_s3, 128 }
 0x114   :  { %p394_p7 = scmp.ne.s32.totalorder %s483_s3, %s393_s15  ;;  %p397_p8 = scmp.lt.u32.totalorder %s393_s15, %s483_s3 }
 0x116   :  { %p399_p9 = pnand %p397_p8, %p394_p7 }
 0x118   :  { %402 = shalt.err (!%p399_p9)
}
 0x119   :  { %312 = dma.vmem_to_hbm [thread:$0]  %s310_s12, 128, %s483_s3, [#allocation4]  }
 0x11a   :  { %407 = dma.done.wait [#allocation4], 128  }
 0x11b   :  { %408 = vsyncadd [#allocation4], 4294967168 }
 0x11c   :  { %316 = vsyncpa [#allocation3], 1 }
 0x11d   :  { %317 = vsyncpa [#allocation6], 1 }
 0x11e   :  { %318 = vsyncpa [#allocation4], 1 }

</bundles_post_ra>
